<compile_context>
chip_gen: v5e
topology: v5e:2x2
jax: 0.10.0
libtpu: 0.0.40
codegen_flags: <defaults>
</compile_context>

<pallas_src>
import functools

import jax
import jax.numpy as jnp
from jax.experimental import pallas as pl
from jax.experimental.pallas import tpu as pltpu

_MiB = 1 << 20

# Above this channel count the (C,C)x(C,T) product goes to the MXU.  The
# unrolled VPU MAC costs ~2C VALU ops/element against a fixed 8 B/element of
# HBM traffic, so it stops being memory-bound around C~8-32 depending on chip
# (VALU/HBM roofline ~4.7 ops/B v5e, ~2.9 v6e, ~1.3 v7x).  8 is safe everywhere.
# TODO(synk): drop to 4 on v7x once ChipVersion detection is wired up.
_VPU_MAX_C = 8

# Live per-step VMEM slabs of size c*tile*itemsize: x (double-buffered) +
# out (double-buffered) + x2 temp + matmul/norm result + epilogue temp.
_LIVE_SLABS = 7


def _igdn_kernel(x_ref, gamma_ref, beta_ref, o_ref, *, use_bf16_mxu):
    # x_ref:     (C, T)  channels x pixel tile (one batch image)
    # gamma_ref: (C, C)  float32
    # beta_ref:  (C, 1)  float32
    # o_ref:     (C, T)
    x = x_ref[...]
    xf = x.astype(jnp.float32)
    x2 = xf * xf
    gamma = gamma_ref[...]
    beta = beta_ref[...]
    c = x.shape[0]

    if c <= _VPU_MAX_C:
        # Tiny channel counts: an unrolled VPU multiply-accumulate over j.
        # With c <= 8 the x2 temporary is at most 8 sublane rows, so the VMEM
        # cost of materializing it is negligible.
        acc = gamma[:, 0:1] * x2[0:1, :]
        for j in range(1, c):
            acc = acc + gamma[:, j:j + 1] * x2[j:j + 1, :]
        norm = acc + beta
    else:
        # Large C: single MXU matmul per tile.  bf16 inputs (optional) cut MXU
        # passes ~4x and halve the x2 slab; useful on v5e for C >= ~192 where
        # the f32-emulated MXU becomes the binding unit.  Accuracy drops to
        # ~1e-3 relative, so it is opt-in.
        if use_bf16_mxu:
            norm = jnp.dot(gamma.astype(jnp.bfloat16), x2.astype(jnp.bfloat16),
                           preferred_element_type=jnp.float32) + beta
        else:
            norm = jnp.dot(gamma, x2, preferred_element_type=jnp.float32) + beta

    # norm >= 0 mathematically (gamma, beta >= 0 after the reparameterization);
    # the max also guards garbage lanes of a partial last tile from sqrt(<0).
    norm = jnp.maximum(norm, 0.0)
    o_ref[...] = (xf * jnp.sqrt(norm)).astype(o_ref.dtype)


def _vmem_capacity_bytes():
    """Physical VMEM of the current chip; conservative fallback if unknown."""
    try:
        return int(pltpu.get_tpu_info().vmem_capacity_bytes)
    except Exception:  # pragma: no cover - older jax / non-TPU trace
        return 64 * _MiB  # v7x per-TC physical VMEM (most restrictive)


def _choose_tile_hw(n, hw, c, itemsize, *, slab_budget_bytes,
                    target_slab_bytes=4 * _MiB):
    """Pick the pixel (lane) tile length.

    The op is HBM-bandwidth-bound, so the tile only needs to be big enough that
    one c*tile*itemsize slab is ~target_slab_bytes (DMA time >> 0.35 us step
    overhead), while the total of _LIVE_SLABS such slabs stays inside the
    per-generation VMEM budget.
    """
    elem = c * itemsize
    max_by_vmem = max(128, slab_budget_bytes // (_LIVE_SLABS * elem))
    want = -(-target_slab_bytes // elem)          # lanes for ~target bytes/slab
    tile = min(hw, max_by_vmem, max(want, 2048))
    if n == 1:
        # Keep >= ~8 grid steps so both v7x TensorCores each get a pipelined
        # stream (>= 4 steps) and input/compute/output DMAs overlap.
        tile = min(tile, max(1024, -(-hw // 8)))
    if tile < hw:
        tile = max(128, (tile // 128) * 128)      # lane-dense partial tiles
    else:
        tile = hw
    return tile


def igdn_pallas(x_nchw_flat, gamma, beta_col, *, tile_hw=None, use_bf16_mxu=False):
    """x_nchw_flat: (N, C, HW); gamma: (C, C) f32; beta_col: (C, 1) f32."""
    n, c, hw = x_nchw_flat.shape

    phys = _vmem_capacity_bytes()
    # v5e/v6e (128 MiB physical) -> ~96 MiB scoped limit; v7x (64 MiB) -> ~48 MiB.
    vmem_limit_bytes = max(32 * _MiB, min(int(phys * 0.75), phys - 16 * _MiB))
    # ~80% of the scoped limit goes to the per-step tile slabs; the rest is
    # headroom for gamma/beta, semaphores and compiler-internal scratch.
    slab_budget = int(vmem_limit_bytes * 0.8)

    if tile_hw is None:
        tile_hw = _choose_tile_hw(n, hw, c, x_nchw_flat.dtype.itemsize,
                                  slab_budget_bytes=slab_budget)
    grid = (n, pl.cdiv(hw, tile_hw))

    kernel = functools.partial(_igdn_kernel, use_bf16_mxu=use_bf16_mxu)
    return pl.pallas_call(
        kernel,
        out_shape=jax.ShapeDtypeStruct((n, c, hw), x_nchw_flat.dtype),
        grid_spec=pltpu.PrefetchScalarGridSpec(
            num_scalar_prefetch=0,
            grid=grid,
            in_specs=[
                pl.BlockSpec((None, c, tile_hw), lambda b, t: (b, 0, t)),
                pl.BlockSpec((c, c), lambda b, t: (0, 0)),
                pl.BlockSpec((c, 1), lambda b, t: (0, 0)),
            ],
            out_specs=pl.BlockSpec((None, c, tile_hw), lambda b, t: (b, 0, t)),
        ),
        compiler_params=pltpu.CompilerParams(
            dimension_semantics=("parallel", "parallel"),
            vmem_limit_bytes=vmem_limit_bytes,
        ),
    )(x_nchw_flat, gamma, beta_col)


class IGDNParams:
    """Deterministic parameter construction matching the PyTorch module's build()."""

    def __init__(self, ch, beta_min=1e-6, gamma_init=0.1, reparam_offset=2 ** (-18)):
        self.ch = ch
        self.pedestal = reparam_offset ** 2
        self.beta_bound = (beta_min + reparam_offset ** 2) ** 0.5
        self.gamma_bound = reparam_offset
        # beta = sqrt(ones(ch) + pedestal)
        self.beta = jnp.sqrt(jnp.ones((ch,), jnp.float32) + self.pedestal)
        # gamma = sqrt(gamma_init * eye(ch) + pedestal)
        self.gamma = jnp.sqrt(gamma_init * jnp.eye(ch, dtype=jnp.float32)
                              + self.pedestal)


def _reparam(params: IGDNParams):
    # LowerBound forward == clamp/maximum.
    beta = jnp.maximum(params.beta.astype(jnp.float32), params.beta_bound)
    beta = beta * beta - params.pedestal                      # (C,)
    gamma = jnp.maximum(params.gamma.astype(jnp.float32), params.gamma_bound)
    gamma = gamma * gamma - params.pedestal                   # (C, C), out-ch x in-ch
    return beta, gamma


def igdn_forward(x_nchw, params: IGDNParams, *, tile_hw=None, use_bf16_mxu=False):
    N, C, H, W = x_nchw.shape
    beta, gamma = _reparam(params)
    # Free view: NCHW -> (N, C, HW).  Input dtype is preserved end-to-end;
    # the kernel computes internally in f32.
    x_flat = x_nchw.reshape(N, C, H * W)
    out_flat = igdn_pallas(x_flat, gamma, beta.reshape(C, 1),
                           tile_hw=tile_hw, use_bf16_mxu=use_bf16_mxu)
    return out_flat.reshape(N, C, H, W)


def igdn_reference(x_nchw, params: IGDNParams):
    """Pure-JAX reference mirroring the PyTorch forward (f32, exact matmul)."""
    beta, gamma = _reparam(params)
    xf = x_nchw.astype(jnp.float32)
    x2 = xf * xf
    # 1x1 conv: out[n,i,h,w] = sum_j gamma[i,j] * x2[n,j,h,w] + beta[i]
    norm = jnp.einsum("ij,njhw->nihw", gamma, x2,
                      precision=jax.lax.Precision.HIGHEST)
    norm = norm + beta[None, :, None, None]
    return (xf * jnp.sqrt(norm)).astype(x_nchw.dtype)


if __name__ == "__main__":
    key = jax.random.PRNGKey(0)
    k1, k2, k3 = jax.random.split(key, 3)

    # --- Test 1: tiny C (VPU branch), single full tile --------------------
    N, C, H, W = 2, 4, 16, 16
    x = jax.random.normal(k1, (N, C, H, W), dtype=jnp.float32)
    params = IGDNParams(C)

    out = jax.jit(functools.partial(igdn_forward, params=params))(x)
    out = jax.block_until_ready(out)
    ref = igdn_reference(x, params)
    assert out.shape == (N, C, H, W) and out.dtype == jnp.float32
    assert jnp.allclose(out, ref, atol=1e-5, rtol=1e-5), "mismatch (VPU branch)"

    # --- Test 2: C=64 (MXU branch), off-diagonal gamma, partial last tile --
    N2, C2, H2, W2 = 1, 64, 5, 37                      # hw = 185, not % 128
    x2_in = jax.random.normal(k2, (N2, C2, H2, W2), dtype=jnp.float32)
    params2 = IGDNParams(C2)
    params2.gamma = params2.gamma + 0.03 * jnp.abs(
        jax.random.normal(k3, (C2, C2), dtype=jnp.float32))

    out2 = jax.jit(functools.partial(igdn_forward, params=params2,
                                     tile_hw=128))(x2_in)   # force 2 tiles
    out2 = jax.block_until_ready(out2)
    ref2 = igdn_reference(x2_in, params2)
    assert out2.shape == (N2, C2, H2, W2)
    assert jnp.allclose(out2, ref2, atol=1e-4, rtol=1e-4), "mismatch (MXU branch)"

    print("KERNEL_OK")
</pallas_src>

<mosaic_0001>
module attributes {stable_mosaic.version = 11 : i64} {
  func.func @_igdn_kernel(%arg0: i32, %arg1: i32, %arg2: memref<1x4x256xf32, #tpu.memory_space<vmem>>, %arg3: memref<4x4xf32, #tpu.memory_space<vmem>>, %arg4: memref<4x1xf32, #tpu.memory_space<vmem>>, %arg5: memref<1x4x256xf32, #tpu.memory_space<vmem>>) attributes {dimension_semantics = [#tpu.dimension_semantics<parallel>, #tpu.dimension_semantics<parallel>], iteration_bounds = array<i64: 2, 1>, scalar_prefetch = 0 : i64, scratch_operands = 0 : i64, tpu.core_type = #tpu.core_type<tc>, window_params = [{transform_indices = @transform_0, window_bounds = array<i64: 1, 4, 256>}, {pipeline_mode = #tpu.pipeline_mode<synchronous>, transform_indices = @transform_1, window_bounds = array<i64: 4, 4>}, {pipeline_mode = #tpu.pipeline_mode<synchronous>, transform_indices = @transform_2, window_bounds = array<i64: 4, 1>}, {transform_indices = @transform_3, window_bounds = array<i64: 1, 4, 256>}]} {
    %c0 = arith.constant 0 : index
    %c0_0 = arith.constant 0 : index
    %c0_1 = arith.constant 0 : index
    %0 = vector.load %arg2[%c0, %c0_0, %c0_1] : memref<1x4x256xf32, #tpu.memory_space<vmem>>, vector<1x4x256xf32>
    %1 = vector.shape_cast %0 : vector<1x4x256xf32> to vector<4x256xf32>
    %2 = arith.mulf %1, %1 : vector<4x256xf32>
    %c0_2 = arith.constant 0 : index
    %c0_3 = arith.constant 0 : index
    %3 = vector.load %arg3[%c0_2, %c0_3] : memref<4x4xf32, #tpu.memory_space<vmem>>, vector<4x4xf32>
    %c0_4 = arith.constant 0 : index
    %c0_5 = arith.constant 0 : index
    %4 = vector.load %arg4[%c0_4, %c0_5] : memref<4x1xf32, #tpu.memory_space<vmem>>, vector<4x1xf32>
    %5 = vector.extract_strided_slice %3 {offsets = [0, 0], sizes = [4, 1], strides = [1, 1]} : vector<4x4xf32> to vector<4x1xf32>
    %6 = vector.extract_strided_slice %2 {offsets = [0, 0], sizes = [1, 256], strides = [1, 1]} : vector<4x256xf32> to vector<1x256xf32>
    %7 = vector.broadcast %5 : vector<4x1xf32> to vector<4x256xf32>
    %8 = vector.broadcast %6 : vector<1x256xf32> to vector<4x256xf32>
    %9 = arith.mulf %7, %8 : vector<4x256xf32>
    %10 = vector.extract_strided_slice %3 {offsets = [0, 1], sizes = [4, 1], strides = [1, 1]} : vector<4x4xf32> to vector<4x1xf32>
    %11 = vector.extract_strided_slice %2 {offsets = [1, 0], sizes = [1, 256], strides = [1, 1]} : vector<4x256xf32> to vector<1x256xf32>
    %12 = vector.broadcast %10 : vector<4x1xf32> to vector<4x256xf32>
    %13 = vector.broadcast %11 : vector<1x256xf32> to vector<4x256xf32>
    %14 = arith.mulf %12, %13 : vector<4x256xf32>
    %15 = arith.addf %9, %14 : vector<4x256xf32>
    %16 = vector.extract_strided_slice %3 {offsets = [0, 2], sizes = [4, 1], strides = [1, 1]} : vector<4x4xf32> to vector<4x1xf32>
    %17 = vector.extract_strided_slice %2 {offsets = [2, 0], sizes = [1, 256], strides = [1, 1]} : vector<4x256xf32> to vector<1x256xf32>
    %18 = vector.broadcast %16 : vector<4x1xf32> to vector<4x256xf32>
    %19 = vector.broadcast %17 : vector<1x256xf32> to vector<4x256xf32>
    %20 = arith.mulf %18, %19 : vector<4x256xf32>
    %21 = arith.addf %15, %20 : vector<4x256xf32>
    %22 = vector.extract_strided_slice %3 {offsets = [0, 3], sizes = [4, 1], strides = [1, 1]} : vector<4x4xf32> to vector<4x1xf32>
    %23 = vector.extract_strided_slice %2 {offsets = [3, 0], sizes = [1, 256], strides = [1, 1]} : vector<4x256xf32> to vector<1x256xf32>
    %24 = vector.broadcast %22 : vector<4x1xf32> to vector<4x256xf32>
    %25 = vector.broadcast %23 : vector<1x256xf32> to vector<4x256xf32>
    %26 = arith.mulf %24, %25 : vector<4x256xf32>
    %27 = arith.addf %21, %26 : vector<4x256xf32>
    %28 = vector.broadcast %4 : vector<4x1xf32> to vector<4x256xf32>
    %29 = arith.addf %27, %28 : vector<4x256xf32>
    %cst = arith.constant 0.000000e+00 : f32
    %30 = vector.broadcast %cst : f32 to vector<4x256xf32>
    %31 = arith.maximumf %29, %30 : vector<4x256xf32>
    %32 = math.sqrt %31 : vector<4x256xf32>
    %33 = arith.mulf %1, %32 : vector<4x256xf32>
    %c0_6 = arith.constant 0 : index
    %c0_7 = arith.constant 0 : index
    %c0_8 = arith.constant 0 : index
    %34 = vector.load %arg5[%c0_6, %c0_7, %c0_8] : memref<1x4x256xf32, #tpu.memory_space<vmem>>, vector<1x4x256xf32>
    %35 = vector.shape_cast %34 : vector<1x4x256xf32> to vector<4x256xf32>
    %36 = vector.shape_cast %33 : vector<4x256xf32> to vector<1x4x256xf32>
    tpu.vector_store %arg5[%c0_6, %c0_7, %c0_8], %36 {strides = array<i32>} : memref<1x4x256xf32, #tpu.memory_space<vmem>>, vector<1x4x256xf32>,
    return
  }
  func.func @transform_0(%arg0: i32, %arg1: i32) -> (i32, i32, i32) {
    %c0_i32 = arith.constant 0 : i32
    %c0_i32_0 = arith.constant 0 : i32
    return %arg0, %c0_i32, %arg1 : i32, i32, i32
  }
  func.func @transform_1(%arg0: i32, %arg1: i32) -> (i32, i32) {
    %c0_i32 = arith.constant 0 : i32
    %c0_i32_0 = arith.constant 0 : i32
    %c0_i32_1 = arith.constant 0 : i32
    return %c0_i32, %c0_i32_0 : i32, i32
  }
  func.func @transform_2(%arg0: i32, %arg1: i32) -> (i32, i32) {
    %c0_i32 = arith.constant 0 : i32
    %c0_i32_0 = arith.constant 0 : i32
    %c0_i32_1 = arith.constant 0 : i32
    return %c0_i32, %c0_i32_0 : i32, i32
  }
  func.func @transform_3(%arg0: i32, %arg1: i32) -> (i32, i32, i32) {
    %c0_i32 = arith.constant 0 : i32
    %c0_i32_0 = arith.constant 0 : i32
    return %arg0, %c0_i32, %arg1 : i32, i32, i32
  }
}

</mosaic_0001>

<bundles_post_ra>
// kernel: igdn_forward.1
= control target key start
LH: loop header
LB: loop body
LE: loop exit
PB: predicated region body
PF: predicated region fallthrough
CT: control target
= control target key end

     0   :  { %s497_s12 = smov 0   ;;  %s499_s13 = smov 0   ;;  %s548_s0 = inlined_call_operand.vmem [shape: f32[2,4,256], index: 0, kind: input, shape index: {}]   ;;  %s549_s1 = inlined_call_operand.vmem [shape: f32[4,4], index: 1, kind: input, shape index: {}]   ;;  %s550_s2 = inlined_call_operand.vmem [shape: f32[4,1], index: 2, kind: input, shape index: {}]   ;;  %s551_s3 = inlined_call_operand.vmem [shape: f32[2,4,256], index: 3, kind: output, shape index: {}]  }
   0x1   :  { %s501_s14 = smov 0  }
   0x2 LB: > { %s25_s15 = sadd.s32 1, %s467_s13  ;;  %p402_p0 = scmp.ge.s32.totalorder %s471_s14, 1  ;;  %s471_s14 = sphi %s501_s14, %s13_s14   ;;  %s467_s13 = sphi %s499_s13, %s553_s13   ;;  %s463_s12 = sphi %s497_s12, %s552_s12  }
   0x3   : > { %p27_p1 = scmp.ge.s32.totalorder %s25_s15, 2  ;;  %p158_p2 = scmp.lt.s32.totalorder %s471_s14, 3 }
   0x5   : > { %s555_s15 = smov (%p27_p1, %s25_s15), 0  ;;  %p159_p3 = pnand %p402_p0, %p158_p2 }
   0x6   : > { %p191_p4 = scmp.lt.s32.totalorder (!%p159_p3), %s463_s12, 1 }
   0x7   : > { %162 = sbr.rel (%p159_p3) target bundleno = 178 (0xb2), region = 32 }
   0xc   : > { %v212_v0 = vld [vmem:[%s549_s1] sm:$0xf]  ;;  %v473_v1 = vmov 0   ;;  %v474_v2 = vmov 2   ;;  %v475_v4 = vmov 1   ;;  %v476_v5 = vmov 3  }
   0xd   : > { %439 = vset.pattern.permute.xlu0 %v473_v1  ;;  %441 = vset.pattern.permute.xlu1 %v474_v2  ;;  %v213_v3 = vld [vmem:[%s550_s2] sm:$0xf]  ;;  %s557_s12 = smov (!%p191_p4, %s463_s12), 1  ;;  %vm306_vm3 = vcmask 1043456  }
   0xe   : > { %216 = vperm.xlu0 %439, %v212_v0   ;;  %243 = vperm.xlu1 %441, %v212_v0   ;;  %s409_s20 = sshll.u32 %s557_s12, 3 }
   0xf   : > { %443 = vset.pattern.permute.xlu2 %v473_v1  ;;  %s198_s23 = scalar_lea.vmem %s548_s0, %s409_s20  ;;  %s208_s26 = scalar_lea.vmem %s551_s3, %s409_s20 }
  0x10   : > { %272 = vperm.xlu2 %443, %v213_v3   ;;  %v529_v6 = vld [vmem:[%s198_s23] sm:$0xff] }
  0x11   : > { %v211_v7 = vmul.f32 %v529_v6, %v529_v6 }
  0x13   : > { %v220_v10 = vperm.slane %v211_v7, 0  ;;  %v221_v11 = vperm.slane %v211_v7, 4  ;;  %v232_v12 = vperm.slane %v211_v7, 1  ;;  %v233_v13 = vperm.slane %v211_v7, 5 }
  0x14   : > { %v246_v14 = vperm.slane %v211_v7, 2  ;;  %v247_v15 = vperm.slane %v211_v7, 6  ;;  %v260_v16 = vperm.slane %v211_v7, 3  ;;  %v261_v17 = vperm.slane %v211_v7, 7 }
  0x15   : > { %v224_v18 = vperm.slane %v220_v10, 0  ;;  %v225_v19 = vperm.slane %v221_v11, 0  ;;  %v236_v20 = vperm.slane %v232_v12, 1  ;;  %v237_v21 = vperm.slane %v233_v13, 1 }
  0x16   : > { %440 = vset.pattern.permute.xlu0 %v475_v4  ;;  %442 = vset.pattern.permute.xlu1 %v476_v5  ;;  %v250_v22 = vperm.slane %v246_v14, 2  ;;  %v251_v23 = vperm.slane %v247_v15, 2  ;;  %v264_v24 = vperm.slane %v260_v16, 3  ;;  %v265_v25 = vperm.slane %v261_v17, 3 }
  0x17   : > { %229 = vperm.xlu0 %440, %v212_v0   ;;  %257 = vperm.xlu1 %442, %v212_v0  }
  0x1f   : > { %444 = vset.pattern.permute.xlu0 %v473_v1 }
  0x6a   : > { %v273_v40 = vpop.permute.xlu2 %272 }
  0x80   : > { %v217_v8 = vpop.permute.xlu0 %216  ;;  %v244_v9 = vpop.permute.xlu1 %243 }
  0x81   : > { %v226_v28 = vmul.f32 %v224_v18, %v217_v8  ;;  %v227_v29 = vmul.f32 %v225_v19, %v217_v8  ;;  %v252_v32 = vmul.f32 %v250_v22, %v244_v9  ;;  %v253_v33 = vmul.f32 %v251_v23, %v244_v9 }
  0x89   : > { %v230_v26 = vpop.permute.xlu0 %229  ;;  %v258_v27 = vpop.permute.xlu1 %257 }
  0x8a   : > { %v238_v30 = vmul.f32 %v236_v20, %v230_v26  ;;  %v239_v31 = vmul.f32 %v237_v21, %v230_v26  ;;  %v266_v36 = vmul.f32 %v264_v24, %v258_v27  ;;  %v267_v37 = vmul.f32 %v265_v25, %v258_v27 }
  0x8c   : > { %v240_v34 = vadd.f32 %v238_v30, %v226_v28  ;;  %v241_v35 = vadd.f32 %v239_v31, %v227_v29 }
  0x8e   : > { %v254_v38 = vadd.f32 %v252_v32, %v240_v34  ;;  %v255_v39 = vadd.f32 %v253_v33, %v241_v35 }
  0x90   : > { %v268_v41 = vadd.f32 %v266_v36, %v254_v38  ;;  %v269_v42 = vadd.f32 %v267_v37, %v255_v39 }
  0x92   : > { %v275_v43 = vadd.f32 %v273_v40, %v268_v41  ;;  %v276_v44 = vadd.f32 %v273_v40, %v269_v42 }
  0x94   : > { %v277_v45 = vmax.f32 %v275_v43, 0.0  ;;  %v278_v46 = vmax.f32 %v276_v44, 0.0 }
  0x96   : > { %445 = vrsqrt.f32 %v277_v45  ;;  %vm286_vm0 = vcmp.eq.f32.partialorder %v277_v45, inf  ;;  %vm298_vm1 = vcmp.eq.f32.partialorder %v278_v46, inf  ;;  %v301_v61 = vand.u32 2147483648, %v278_v46 }
  0x97   : > { %447 = vrsqrt.f32 %v278_v46  ;;  %vm300_vm2 = vcmp.eq.f32.partialorder %v278_v46, 0.0  ;;  %v289_v0 = vand.u32 2147483648, %v277_v45  ;;  %vm288_vm4 = vcmp.eq.f32.partialorder %v277_v45, 0.0 }
  0x9c   : > { %v446_v47 = vpop.eup %445 }
  0x9d   : > { %v448_v48 = vpop.eup %447  ;;  %v280_v49 = vmul.f32 %v446_v47, %v277_v45 }
  0x9e   : > { %v292_v50 = vmul.f32 %v448_v48, %v278_v46 }
  0x9f   : > { %v281_v51 = vmul.f32 %v446_v47, %v280_v49 }
  0xa0   : > { %v293_v52 = vmul.f32 %v448_v48, %v292_v50 }
  0xa1   : > { %v282_v53 = vmul.f32 0.5, %v281_v51 }
  0xa2   : > { %v294_v54 = vmul.f32 0.5, %v293_v52 }
  0xa3   : > { %v283_v55 = vsub.f32 1.5, %v282_v53 }
  0xa4   : > { %v295_v56 = vsub.f32 1.5, %v294_v54 }
  0xa5   : > { %v284_v57 = vmul.f32 %v446_v47, %v283_v55 }
  0xa6   : > { %v296_v58 = vmul.f32 %v448_v48, %v295_v56 }
  0xa7   : > { %v285_v59 = vmul.f32 %v284_v57, %v277_v45 }
  0xa8   : > { %v297_v60 = vmul.f32 %v296_v58, %v278_v46 }
  0xa9   : > { %v287_v62 = vsel %vm286_vm0, %v277_v45, %v285_v59 }
  0xaa   : > { %v299_v63 = vsel %vm298_vm1, %v278_v46, %v297_v60  ;;  %v290_v3 = vsel %vm288_vm4, %v289_v0, %v287_v62 }
  0xab   : > { %v302_v1 = vsel %vm300_vm2, %v301_v61, %v299_v63 }
  0xac   : > { %v305_v2 = vrot.slane %v302_v1, 4 }
  0xae   : > { %v307_v4 = vsel %vm306_vm3, %v290_v3, %v305_v2 }
  0xaf   : > { %v309_v5 = vmul.f32 %v307_v4, %v529_v6 }
  0xb1   : > { %310 = vst [vmem:[%s208_s26] sm:$0xff] %v309_v5 }
  0xb2 PF: > { %s13_s14 = sadd.s32 1, %s471_s14   ;;  %s552_s12 = smov %s467_s13 }
  0xb3   : > { %p10_p5 = scmp.ge.s32.totalorder %s13_s14, 4   ;;  %s553_s13 = smov %s555_s15 }
  0xb5   :  { %12 = sbr.rel (!%p10_p5) target bundleno = 2 (0x2), region = 62 }

</bundles_post_ra>
